<compile_context>
chip_gen: v7x
topology: tpu7x:2x2x1
jax: 0.10.0
libtpu: 0.0.40
codegen_flags: <defaults>
</compile_context>

<pallas_src>
from functools import partial

import jax
import jax.numpy as jnp
from jax.experimental import pallas as pl
from jax.experimental.pallas import tpu as pltpu


def damp_matrix_kernel(w1_ref, b1_ref, w2_ref, b2_ref, w3_ref, dd_ref):
    # MLP on the constant input ones(1): linear1(1) == W1[:, 0] + b1 == w1 + b1.
    h1 = jnp.tanh(w1_ref[...] + b1_ref[...])                                     # (1, H)
    h2 = jnp.tanh(
        jnp.dot(h1, w2_ref[...], preferred_element_type=jnp.float32) + b2_ref[...]
    )                                                                            # (1, H)
    d = jnp.tanh(jnp.dot(h2, w3_ref[...], preferred_element_type=jnp.float32))   # (1, 1)
    dd_ref[...] = d * d                                                          # (1, 1) scalar dd


@partial(jax.jit, static_argnames=("bs",))
def _damp_matrix_impl(w1_t, b1, w2_t, b2, w3_t, *, bs):
    dd = pl.pallas_call(
        damp_matrix_kernel,
        out_shape=jax.ShapeDtypeStruct((1, 1), jnp.float32),
        in_specs=[pl.BlockSpec(memory_space=pltpu.MemorySpace.VMEM)] * 5,
        out_specs=pl.BlockSpec(memory_space=pltpu.MemorySpace.VMEM),
    )(w1_t, b1, w2_t, b2, w3_t)
    # Batch-independent broadcast done in XLA (fused, lane-dense); the kernel
    # never materializes the O(bs) mostly-zero output.
    D = jnp.zeros((bs, 2, 2), jnp.float32)
    return D.at[:, 1, 1].set(dd[0, 0])


def damp_matrix_forward(x, w1_t, b1, w2_t, b2, w3_t):
    """x: (bs, 2) float32 (only bs is used, matching the PyTorch module)."""
    return _damp_matrix_impl(w1_t, b1, w2_t, b2, w3_t, bs=x.shape[0])


def init_params(key, input_dim, hidden_dim):
    """Deterministic parameter init mirroring the module's shapes.

    linear1: Linear(input_dim // 2, hidden_dim)  -> W1 (H, in/2), b1 (H,)
    linear2: Linear(hidden_dim, hidden_dim)      -> W2 (H, H),    b2 (H,)
    linear3: Linear(hidden_dim, 1, bias=None)    -> W3 (1, H)
    Weights use orthogonal init (as in the module); biases use a small uniform.
    """
    in_half = input_dim // 2
    k1, k2, k3, k4, k5 = jax.random.split(key, 5)
    ortho = jax.nn.initializers.orthogonal()
    W1 = ortho(k1, (hidden_dim, in_half), jnp.float32)   # (H, 1)
    W2 = ortho(k2, (hidden_dim, hidden_dim), jnp.float32)
    W3 = ortho(k3, (1, hidden_dim), jnp.float32)
    b1 = jax.random.uniform(k4, (hidden_dim,), jnp.float32, -0.1, 0.1)
    b2 = jax.random.uniform(k5, (hidden_dim,), jnp.float32, -0.1, 0.1)

    # Kernel layout: (in, out) weights, (1, H) biases.
    w1_t = W1.T                      # (1, H)   (in_half == 1)
    w2_t = W2.T                      # (H, H)
    w3_t = W3.T                      # (H, 1)
    b1_r = b1.reshape(1, hidden_dim)
    b2_r = b2.reshape(1, hidden_dim)
    return w1_t, b1_r, w2_t, b2_r, w3_t


def reference_forward(x, w1_t, b1, w2_t, b2, w3_t):
    """Pure-JAX reference matching the PyTorch forward."""
    bs = x.shape[0]
    h = jnp.tanh(jnp.ones((1, 1), jnp.float32) @ w1_t + b1)   # (1, H)
    h = jnp.tanh(h @ w2_t + b2)                                # (1, H)
    d = jnp.tanh(h @ w3_t)                                     # (1, 1)
    D = jnp.zeros((bs, 2, 2), jnp.float32)
    return D.at[:, 1, 1].set((d * d)[0, 0])


if __name__ == "__main__":
    key = jax.random.PRNGKey(0)
    kx, kp = jax.random.split(key)

    input_dim, hidden_dim, bs = 2, 32, 2
    x = jax.random.normal(kx, (bs, input_dim), jnp.float32)   # (2, 2); q, p unused
    params = init_params(kp, input_dim, hidden_dim)

    out = damp_matrix_forward(x, *params)
    out = jax.block_until_ready(out)

    ref = reference_forward(x, *params)
    assert out.shape == (bs, 2, 2)
    assert jnp.allclose(out, ref, atol=1e-5, rtol=1e-5), (out, ref)
    print("KERNEL_OK")
</pallas_src>

<mosaic_0001>
module attributes {stable_mosaic.version = 11 : i64} {
  func.func @damp_matrix_kernel(%arg0: memref<1x32xf32, #tpu.memory_space<vmem>>, %arg1: memref<1x32xf32, #tpu.memory_space<vmem>>, %arg2: memref<32x32xf32, #tpu.memory_space<vmem>>, %arg3: memref<1x32xf32, #tpu.memory_space<vmem>>, %arg4: memref<32x1xf32, #tpu.memory_space<vmem>>, %arg5: memref<1x1xf32, #tpu.memory_space<vmem>>) attributes {dimension_semantics = [], scalar_prefetch = 0 : i64, scratch_operands = 0 : i64, tpu.core_type = #tpu.core_type<tc>} {
    %c0 = arith.constant 0 : index
    %c0_0 = arith.constant 0 : index
    %0 = vector.load %arg0[%c0, %c0_0] : memref<1x32xf32, #tpu.memory_space<vmem>>, vector<1x32xf32>
    %c0_1 = arith.constant 0 : index
    %c0_2 = arith.constant 0 : index
    %1 = vector.load %arg1[%c0_1, %c0_2] : memref<1x32xf32, #tpu.memory_space<vmem>>, vector<1x32xf32>
    %2 = arith.addf %0, %1 : vector<1x32xf32>
    %3 = math.tanh %2 : vector<1x32xf32>
    %c0_3 = arith.constant 0 : index
    %c0_4 = arith.constant 0 : index
    %4 = vector.load %arg2[%c0_3, %c0_4] : memref<32x32xf32, #tpu.memory_space<vmem>>, vector<32x32xf32>
    %cst = arith.constant dense<0.000000e+00> : vector<1x32xf32>
    %5 = tpu.matmul %3, %4, %cst {dimension_numbers = #tpu.dot_dimension_numbers<[1], [0], [0], [1], [0, 0, 1, 1], [], []>} : vector<1x32xf32>, vector<32x32xf32>, vector<1x32xf32> -> vector<1x32xf32>
    %c0_5 = arith.constant 0 : index
    %c0_6 = arith.constant 0 : index
    %6 = vector.load %arg3[%c0_5, %c0_6] : memref<1x32xf32, #tpu.memory_space<vmem>>, vector<1x32xf32>
    %7 = arith.addf %5, %6 : vector<1x32xf32>
    %8 = math.tanh %7 : vector<1x32xf32>
    %c0_7 = arith.constant 0 : index
    %c0_8 = arith.constant 0 : index
    %9 = vector.load %arg4[%c0_7, %c0_8] : memref<32x1xf32, #tpu.memory_space<vmem>>, vector<32x1xf32>
    %cst_9 = arith.constant dense<0.000000e+00> : vector<1x1xf32>
    %10 = tpu.matmul %8, %9, %cst_9 {dimension_numbers = #tpu.dot_dimension_numbers<[1], [0], [0], [1], [0, 0, 1, 1], [], []>} : vector<1x32xf32>, vector<32x1xf32>, vector<1x1xf32> -> vector<1x1xf32>
    %11 = math.tanh %10 : vector<1x1xf32>
    %12 = arith.mulf %11, %11 : vector<1x1xf32>
    %c0_10 = arith.constant 0 : index
    %c0_11 = arith.constant 0 : index
    %13 = vector.load %arg5[%c0_10, %c0_11] : memref<1x1xf32, #tpu.memory_space<vmem>>, vector<1x1xf32>
    tpu.vector_store %arg5[%c0_10, %c0_11], %12 {strides = array<i32>} : memref<1x1xf32, #tpu.memory_space<vmem>>, vector<1x1xf32>,
    return
  }
}

</mosaic_0001>

<bundles_post_ra>
// kernel: _damp_matrix_impl.1
= control target key start
LH: loop header
LB: loop body
LE: loop exit
PB: predicated region body
PF: predicated region fallthrough
CT: control target
= control target key end

     0   :  { %v280_v3 = vmov 0.0|0.0   ;;  %vm281_vm0 = vmmov 0   ;;  %v282_v6 = vmov 0.0   ;;  %s361_s0 = inlined_call_operand.vmem [shape: f32[1,32], index: 0, kind: input, shape index: {}]   ;;  %s362_s1 = inlined_call_operand.vmem [shape: f32[1,32], index: 1, kind: input, shape index: {}]   ;;  %s363_s2 = inlined_call_operand.vmem [shape: f32[32,32], index: 2, kind: input, shape index: {}]   ;;  %s364_s3 = inlined_call_operand.vmem [shape: f32[1,32], index: 3, kind: input, shape index: {}]   ;;  %s365_s4 = inlined_call_operand.vmem [shape: f32[32,1], index: 4, kind: input, shape index: {}]   ;;  %s366_s5 = inlined_call_operand.hbm [shape: f32[1,1], index: 5, kind: output, shape index: {}]  }
   0x1   :  { %v25_v0 = vld [vmem:[%s363_s2] sm:$0xff]  ;;  %v26_v1 = vld [vmem:[%s363_s2 + $0x8] sm:$0xff]  ;;  %v27_v2 = vld [vmem:[%s363_s2 + $0x10] sm:$0xff]  ;;  %234 = vmatprep.subr.bf16.mxu0 %v280_v3  ;;  %220 = vmatprep.mubr.msk.f32.mxu0 %vm281_vm0, %v282_v6 }
   0x2   :  { %v235_v4 = vpack.c.bf16 %v26_v1, %v25_v0  ;;  %v28_v5 = vld [vmem:[%s363_s2 + $0x18] sm:$0xff]  ;;  %v21_v7 = vld [vmem:[%s361_s0] sm:$0x1]  ;;  %240 = vmatprep.subr.bf16.mxu1 %v280_v3  ;;  %231 = vmatprep.mubr.msk.f32.mxu1 %vm281_vm0, %v282_v6 }
   0x3   :  { %v22_v8 = vld [vmem:[%s362_s1] sm:$0x1] }
   0x4   :  { %v23_v9 = vadd.f32 %v22_v8, %v21_v7 }
   0x5   :  { %10 = vsyncpa [#allocation3], 0  ;;  %236 = vmatpush3.bf16.msra.mxu0 %v235_v4  ;;  %v238_v10 = vpack.c.bf16 %v28_v5, %v27_v2  ;;  %vm30_vm1 = vcmask 261120   ;;  %v105_v12 = vld [vmem:[%s365_s4] sm:$0xff]  ;;  %v106_v13 = vld [vmem:[%s365_s4 + $0x8] sm:$0xff]  ;;  %s283_s12 = smov [#allocation2]  }
   0x6   :  { %237 = vmatprep.subr.bf16.mxu0 %v280_v3  ;;  %250 = vtanh.f32 %v23_v9  ;;  %v107_v14 = vld [vmem:[%s365_s4 + $0x10] sm:$0xff]  ;;  %v241_v15 = vpack.c.bf16 %v106_v13, %v105_v12  ;;  %v108_v16 = vld [vmem:[%s365_s4 + $0x18] sm:$0xff]  ;;  %v29_v18 = vld [vmem:[%s364_s3] sm:$0x1]  ;;  %s192_s4 = sshll.u32 %s283_s12, 4  ;;  %vm184_vm2 = vcmask 0   ;;  %s193_s4 = int_to_ptr.vmem [resolvable:$true] %s192_s4 }
   0x7   :  { %v244_v17 = vpack.c.bf16 %v108_v16, %v107_v14  ;;  %s256_s13 = scalar_lea.vmem %s193_s4, 16  ;;  %s260_s3 = scalar_lea.vmem %s193_s4, 32 }
   0x8   :  { %242 = vmatpush3.bf16.msra.mxu1 %v241_v15  ;;  %p257_p0 = scmp.ne.s32.totalorder %s193_s4, %s256_s13  ;;  %p261_p1 = scmp.lt.s32.totalorder %s193_s4, %s193_s4 }
   0x9   :  { %239 = vmatpush3.bf16.msra.mxu0 %v238_v10  ;;  %243 = vmatprep.subr.bf16.mxu1 %v280_v3  ;;  %p262_p2 = scmp.lt.s32.totalorder %s260_s3, %s256_s13 }
   0xb   :  { %p263_p3 = por %p262_p2, %p261_p1 }
   0xc   :  { %245 = vmatpush3.bf16.msra.mxu1 %v244_v17 }
   0xd   :  { %p264_p4 = pnand %p263_p3, %p257_p0 }
  0x10   :  { %v251_v11 = vpop.eup %250 }
  0x11   :  { %221 = vmatmul.mubr.msk.f32.vlgmr.msra.gmra.mrb[0].mxu0 %vm30_vm1, %v251_v11 }
  0xe4   :  { %v100_v19 = vpop.f32.mrb[0].mxu0 }
  0xe5   :  { %v101_v20 = vadd.f32 %v100_v19, %v29_v18  ;;  %v222_v21 = vpop.f32.mrb[1].mxu0 }
  0xe7   :  { %252 = vtanh.f32 %v101_v20 }
  0xf1   :  { %v253_v22 = vpop.eup %252 }
  0xf2   :  { %232 = vmatmul.mubr.msk.f32.vlgmr.msra.gmra.mrb[0].mxu1 %vm30_vm1, %v253_v22 }
 0x1c5   :  { %v178_v23 = vpop.f32.mrb[0].mxu1 }
 0x1c6   :  { %254 = vtanh.f32 %v178_v23  ;;  %v233_v24 = vpop.f32.mrb[1].mxu1 }
 0x1d0   :  { %v255_v25 = vpop.eup %254 }
 0x1d1   :  { %v183_v26 = vmul.f32 %v255_v25, %v255_v25 }
 0x1d3   :  { %185 = vst.msk [vmem:[#allocation2] sm:$0x1] %vm184_vm2, %v183_v26 }
 0x1d4   :  { %267 = shalt.err (!%p264_p4)
}
 0x1d5   :  { %s268_s16 = scalar_lea.hbm %s366_s5, 16 }
 0x1d6   :  { %p269_p5 = scmp.ne.s32.totalorder %s366_s5, %s268_s16  ;;  %p272_p6 = scmp.lt.u32.totalorder %s268_s16, %s366_s5 }
 0x1d8   :  { %p274_p7 = pnand %p272_p6, %p269_p5 }
 0x1da   :  { %277 = shalt.err (!%p274_p7)
}
 0x1db   :  { %195 = dma.vmem_to_hbm [thread:$0]  %s193_s4, 16, %s366_s5, [#allocation3]  }
 0x1dc   :  { %278 = dma.done.wait [#allocation3], 16  }
 0x1dd   :  { %279 = vsyncadd [#allocation3], 4294967280 }
 0x1de   :  { %199 = vsyncpa [#allocation3], 1 }

</bundles_post_ra>
